<compile_context>
chip_gen: v7x
topology: tpu7x:2x2x1
jax: 0.10.0
libtpu: 0.0.40
codegen_flags: <defaults>
</compile_context>

<pallas_src>
import functools

import jax
import jax.numpy as jnp
from jax.experimental import pallas as pl
from jax.experimental.pallas import tpu as pltpu

INPUT_SIZE = 8      # len(inputColumns)
HIDDEN_SIZE = 32    # hiddenSize
OUTPUT_SIZE = 1     # len(outputColumns)
NUM_HIDDEN_LAYERS = 1

_LANE = 128                     # TPU lane width
_GROUP = _LANE // INPUT_SIZE    # 16 samples packed per 128-lane row


def _round_up(n, m):
    return (n + m - 1) // m * m


def _cdiv(a, b):
    return -(-a // b)


def _mlp_kernel(x_ref, m1_ref, b1_ref, m2_ref, b2_ref, o_ref):
    # x_ref:  (rt, 128)   row r, lane 8*s+f  ==  x[16*R + s, f]   (lane-dense)
    # m1_ref: (128, 512)  block-diag  I_16 (x) W1   (VMEM resident)
    # b1_ref: (1, 512)    b1 tiled 16x
    # m2_ref: (512, 16)   block-diag  I_16 (x) W2
    # b2_ref: (1, 1) SMEM output-bias scalar
    # o_ref:  (rt, 16)    row r, lane s      ==  y[16*R + s]
    x = x_ref[...].astype(m1_ref.dtype)                  # no-op in f32 mode
    h = jnp.dot(x, m1_ref[...],
                preferred_element_type=jnp.float32)      # (rt, 512) on MXU
    h = jnp.maximum(h + b1_ref[...], 0.0)                # bias + ReLU (VPU)
    y = jnp.dot(h, m2_ref[...],
                preferred_element_type=jnp.float32)      # (rt, 16) on MXU
    o_ref[...] = (y + b2_ref[0, 0]).astype(o_ref.dtype)


@functools.partial(jax.jit, static_argnames=("tile_batch", "matmul_dtype"))
def neural_net_regressor(x, w1, b1, w2, b2, *, tile_batch=32768,
                         matmul_dtype=jnp.float32):
    """Forward pass of NeuralNetRegressor.

    x:  [batch, INPUT_SIZE] float32 (or bfloat16)
    w1: [INPUT_SIZE, HIDDEN_SIZE], b1: [1, HIDDEN_SIZE]
    w2: [HIDDEN_SIZE, OUTPUT_SIZE], b2: [1, OUTPUT_SIZE]
    returns [batch, OUTPUT_SIZE] float32
    """
    batch = x.shape[0]
    if x.dtype != jnp.bfloat16:
        x = x.astype(jnp.float32)

    # Only pad when batch isn't a multiple of the 16-sample interleave group
    # (rare; < 16 extra rows). No other wrapper-side data movement.
    pad = (-batch) % _GROUP
    if pad:
        x = jnp.pad(x, ((0, pad), (0, 0)))
    bp = batch + pad
    rows = bp // _GROUP
    xr = x.reshape(rows, _LANE)        # row-major collapse -> free bitcast

    # Samples per tile: lane-aligned, capped at ~half the batch so a 2-TC chip
    # (v7x) always gets >= 2 "parallel" grid steps when the batch allows it.
    t = max(_LANE, _round_up(min(tile_batch, bp), _LANE))
    t = min(t, _round_up(max(_cdiv(bp, 2), 1), _LANE))
    rt = t // _GROUP                   # rows per tile (multiple of 8)
    if rows <= rt:
        rt = rows                      # single full-extent block
    grid = (_cdiv(rows, rt),)          # ragged edge block handled by Pallas

    # Weight repacking (tiny, done once per call):
    #   M1[8s+f, 32s'+j] = W1[f, j] * delta(s, s')
    #   M2[32s+j, s']    = W2[j, 0] * delta(s, s')
    f32 = jnp.float32
    eye = jnp.eye(_GROUP, dtype=f32)
    m1 = jnp.einsum("st,fj->sftj", eye, w1.astype(f32)).reshape(
        _GROUP * INPUT_SIZE, _GROUP * HIDDEN_SIZE).astype(matmul_dtype)
    b1t = jnp.tile(b1.astype(f32).reshape(1, HIDDEN_SIZE), (1, _GROUP))
    m2 = jnp.einsum("st,j->sjt", eye, w2.astype(f32)[:, 0]).reshape(
        _GROUP * HIDDEN_SIZE, _GROUP)
    b2s = b2.astype(f32).reshape(1, 1)

    out_r = pl.pallas_call(
        _mlp_kernel,
        out_shape=jax.ShapeDtypeStruct((rows, _GROUP), jnp.float32),
        grid=grid,
        in_specs=[
            pl.BlockSpec((rt, _LANE), lambda i: (i, 0)),                 # x tile
            pl.BlockSpec((_LANE, _GROUP * HIDDEN_SIZE),
                         lambda i: (0, 0)),                              # M1 (resident)
            pl.BlockSpec((1, _GROUP * HIDDEN_SIZE), lambda i: (0, 0)),   # b1 tiled
            pl.BlockSpec((_GROUP * HIDDEN_SIZE, _GROUP),
                         lambda i: (0, 0)),                              # M2 (resident)
            pl.BlockSpec((1, 1), lambda i: (0, 0),
                         memory_space=pltpu.MemorySpace.SMEM),           # b2 scalar
        ],
        out_specs=pl.BlockSpec((rt, _GROUP), lambda i: (i, 0)),
        compiler_params=pltpu.CompilerParams(
            dimension_semantics=("parallel",),
            vmem_limit_bytes=32 * 1024 * 1024,
        ),
    )(xr, m1, b1t, m2, b2s)

    # (rows, 16) -> (bp, 1) is the inverse bitcast; drop the (rare) pad rows.
    return out_r.reshape(bp, OUTPUT_SIZE)[:batch]


def init_params(key):
    """Deterministic init mimicking PyTorch nn.Linear default:
    U(-1/sqrt(fan_in), 1/sqrt(fan_in)) for both weight and bias."""
    k1, k2, k3, k4 = jax.random.split(key, 4)
    bound1 = 1.0 / jnp.sqrt(INPUT_SIZE)
    bound2 = 1.0 / jnp.sqrt(HIDDEN_SIZE)
    w1 = jax.random.uniform(k1, (INPUT_SIZE, HIDDEN_SIZE), jnp.float32,
                            -bound1, bound1)
    b1 = jax.random.uniform(k2, (1, HIDDEN_SIZE), jnp.float32, -bound1, bound1)
    w2 = jax.random.uniform(k3, (HIDDEN_SIZE, OUTPUT_SIZE), jnp.float32,
                            -bound2, bound2)
    b2 = jax.random.uniform(k4, (1, OUTPUT_SIZE), jnp.float32, -bound2, bound2)
    return w1, b1, w2, b2


def reference_forward(x, w1, b1, w2, b2):
    h = jnp.maximum(x.astype(jnp.float32) @ w1 + b1, 0.0)
    return h @ w2 + b2


if __name__ == "__main__":
    key = jax.random.PRNGKey(0)
    k_params, k_x1, k_x2 = jax.random.split(key, 3)

    w1, b1, w2, b2 = init_params(k_params)

    # Small batch: pads 8 -> 16 samples, single (1, 128) block, grid=(1,).
    batch = 8
    x = jax.random.normal(k_x1, (batch, INPUT_SIZE), dtype=jnp.float32)
    out = jax.block_until_ready(neural_net_regressor(x, w1, b1, w2, b2))
    ref = reference_forward(x, w1, b1, w2, b2)
    assert out.shape == (batch, OUTPUT_SIZE)
    assert jnp.allclose(out, ref, atol=1e-4, rtol=1e-4)

    # Ragged batch + small tile: exercises the %16 pad, multi-step grid and the
    # Pallas-masked ragged edge block (rows=19, rt=8, grid=3).
    batch2 = 300
    x2 = jax.random.normal(k_x2, (batch2, INPUT_SIZE), dtype=jnp.float32)
    out2 = jax.block_until_ready(
        neural_net_regressor(x2, w1, b1, w2, b2, tile_batch=128))
    ref2 = reference_forward(x2, w1, b1, w2, b2)
    assert out2.shape == (batch2, OUTPUT_SIZE)
    assert jnp.allclose(out2, ref2, atol=1e-4, rtol=1e-4)

    # bf16 matmul fast path (f32 accumulation; input quantization error only).
    out3 = jax.block_until_ready(
        neural_net_regressor(x2, w1, b1, w2, b2, matmul_dtype=jnp.bfloat16))
    assert out3.shape == (batch2, OUTPUT_SIZE)
    assert jnp.allclose(out3, ref2, atol=5e-2, rtol=5e-2)

    # TODO(synk): training loop / optimizer from train.py is out of scope; only
    # the forward pass is implemented as a kernel.
    print("KERNEL_OK")
</pallas_src>

<mosaic_0001>
module attributes {stable_mosaic.version = 11 : i64} {
  func.func @_mlp_kernel(%arg0: i32, %arg1: memref<1x128xf32, #tpu.memory_space<vmem>>, %arg2: memref<128x512xf32, #tpu.memory_space<vmem>>, %arg3: memref<1x512xf32, #tpu.memory_space<vmem>>, %arg4: memref<512x16xf32, #tpu.memory_space<vmem>>, %arg5: memref<1x1xf32, #tpu.memory_space<smem>>, %arg6: memref<1x16xf32, #tpu.memory_space<vmem>>) attributes {dimension_semantics = [#tpu.dimension_semantics<parallel>], iteration_bounds = array<i64: 1>, scalar_prefetch = 0 : i64, scratch_operands = 0 : i64, tpu.core_type = #tpu.core_type<tc>, window_params = [{transform_indices = @transform_0, window_bounds = array<i64: 1, 128>}, {pipeline_mode = #tpu.pipeline_mode<synchronous>, transform_indices = @transform_1, window_bounds = array<i64: 128, 512>}, {pipeline_mode = #tpu.pipeline_mode<synchronous>, transform_indices = @transform_2, window_bounds = array<i64: 1, 512>}, {pipeline_mode = #tpu.pipeline_mode<synchronous>, transform_indices = @transform_3, window_bounds = array<i64: 512, 16>}, {transform_indices = @transform_4, window_bounds = array<i64: 1, 1>}, {transform_indices = @transform_5, window_bounds = array<i64: 1, 16>}]} {
    %c0 = arith.constant 0 : index
    %c0_0 = arith.constant 0 : index
    %0 = vector.load %arg1[%c0, %c0_0] : memref<1x128xf32, #tpu.memory_space<vmem>>, vector<1x128xf32>
    %c0_1 = arith.constant 0 : index
    %c0_2 = arith.constant 0 : index
    %1 = vector.load %arg2[%c0_1, %c0_2] : memref<128x512xf32, #tpu.memory_space<vmem>>, vector<128x512xf32>
    %cst = arith.constant dense<0.000000e+00> : vector<1x512xf32>
    %2 = tpu.matmul %0, %1, %cst {dimension_numbers = #tpu.dot_dimension_numbers<[1], [0], [0], [1], [0, 0, 1, 1], [], []>} : vector<1x128xf32>, vector<128x512xf32>, vector<1x512xf32> -> vector<1x512xf32>
    %c0_3 = arith.constant 0 : index
    %c0_4 = arith.constant 0 : index
    %3 = vector.load %arg3[%c0_3, %c0_4] : memref<1x512xf32, #tpu.memory_space<vmem>>, vector<1x512xf32>
    %4 = arith.addf %2, %3 : vector<1x512xf32>
    %cst_5 = arith.constant 0.000000e+00 : f32
    %5 = vector.broadcast %cst_5 : f32 to vector<1x512xf32>
    %6 = arith.maximumf %4, %5 : vector<1x512xf32>
    %c0_6 = arith.constant 0 : index
    %c0_7 = arith.constant 0 : index
    %7 = vector.load %arg4[%c0_6, %c0_7] : memref<512x16xf32, #tpu.memory_space<vmem>>, vector<512x16xf32>
    %cst_8 = arith.constant dense<0.000000e+00> : vector<1x16xf32>
    %8 = tpu.matmul %6, %7, %cst_8 {dimension_numbers = #tpu.dot_dimension_numbers<[1], [0], [0], [1], [0, 0, 1, 1], [], []>} : vector<1x512xf32>, vector<512x16xf32>, vector<1x16xf32> -> vector<1x16xf32>
    %c0_9 = arith.constant 0 : index
    %c0_10 = arith.constant 0 : index
    %9 = memref.load %arg5[%c0_9, %c0_10] : memref<1x1xf32, #tpu.memory_space<smem>>
    %10 = vector.broadcast %9 : f32 to vector<1x16xf32>
    %11 = arith.addf %8, %10 : vector<1x16xf32>
    %c0_11 = arith.constant 0 : index
    %c0_12 = arith.constant 0 : index
    %12 = vector.load %arg6[%c0_11, %c0_12] : memref<1x16xf32, #tpu.memory_space<vmem>>, vector<1x16xf32>
    tpu.vector_store %arg6[%c0_11, %c0_12], %11 {strides = array<i32>} : memref<1x16xf32, #tpu.memory_space<vmem>>, vector<1x16xf32>,
    return
  }
  func.func @transform_0(%arg0: i32) -> (i32, i32) {
    %c0_i32 = arith.constant 0 : i32
    %c0_i32_0 = arith.constant 0 : i32
    return %arg0, %c0_i32 : i32, i32
  }
  func.func @transform_1(%arg0: i32) -> (i32, i32) {
    %c0_i32 = arith.constant 0 : i32
    %c0_i32_0 = arith.constant 0 : i32
    %c0_i32_1 = arith.constant 0 : i32
    return %c0_i32, %c0_i32_0 : i32, i32
  }
  func.func @transform_2(%arg0: i32) -> (i32, i32) {
    %c0_i32 = arith.constant 0 : i32
    %c0_i32_0 = arith.constant 0 : i32
    %c0_i32_1 = arith.constant 0 : i32
    return %c0_i32, %c0_i32_0 : i32, i32
  }
  func.func @transform_3(%arg0: i32) -> (i32, i32) {
    %c0_i32 = arith.constant 0 : i32
    %c0_i32_0 = arith.constant 0 : i32
    %c0_i32_1 = arith.constant 0 : i32
    return %c0_i32, %c0_i32_0 : i32, i32
  }
  func.func @transform_4(%arg0: i32) -> (i32, i32) {
    %c0_i32 = arith.constant 0 : i32
    %c0_i32_0 = arith.constant 0 : i32
    %c0_i32_1 = arith.constant 0 : i32
    return %c0_i32, %c0_i32_0 : i32, i32
  }
  func.func @transform_5(%arg0: i32) -> (i32, i32) {
    %c0_i32 = arith.constant 0 : i32
    %c0_i32_0 = arith.constant 0 : i32
    return %arg0, %c0_i32 : i32, i32
  }
}

</mosaic_0001>

<bundles_post_ra>
// kernel: neural_net_regressor.1
= control target key start
LH: loop header
LB: loop body
LE: loop exit
PB: predicated region body
PF: predicated region fallthrough
CT: control target
= control target key end

     0   :  { %v665_v3 = vmov 0.0   ;;  %vm460_vm0 = vcmask 122880   ;;  %s1092_s1 = inlined_call_operand.vmem [shape: f32[128,512], index: 1, kind: input, shape index: {}]   ;;  %s1093_s3 = inlined_call_operand.vmem [shape: f32[512,16], index: 3, kind: input, shape index: {}]   ;;  %s1094_s0 = inlined_call_operand.vmem [shape: f32[1,128], index: 0, kind: input, shape index: {}]   ;;  %s1095_s2 = inlined_call_operand.vmem [shape: f32[1,512], index: 2, kind: input, shape index: {}]   ;;  %s1096_s4 = inlined_call_operand.<no memory space> [shape: f32[1,1], index: 4, kind: input, shape index: {}]   ;;  %s1097_s5 = inlined_call_operand.vmem [shape: f32[1,16], index: 5, kind: output, shape index: {}]  }
   0x1   :  { %v23_v0 = vld [vmem:[%s1092_s1 + $0x8] sm:$0xff]  ;;  %v25_v2 = vld [vmem:[%s1092_s1 + $0x18] sm:$0xff]  ;;  %172 = vmatprep.mubr.f32.mxu0 %v665_v3  ;;  %243 = vmatprep.mubr.f32.mxu1 %v665_v3  ;;  %v22_v6 = vld [vmem:[%s1092_s1] sm:$0xff] }
   0x2   :  { %v27_v1 = vld [vmem:[%s1092_s1 + $0x28] sm:$0xff]  ;;  %v29_v5 = vld [vmem:[%s1092_s1 + $0x38] sm:$0xff]  ;;  %v26_v7 = vld [vmem:[%s1092_s1 + $0x20] sm:$0xff] }
   0x3   :  { %v536_v4 = vpack.c.bf16 %v27_v1, %v23_v0  ;;  %v568_v8 = vpack.c.bf16 %v29_v5, %v25_v2  ;;  %v538_v9 = vpack.c.bf16 %v26_v7, %v22_v6  ;;  %v24_v10 = vld [vmem:[%s1092_s1 + $0x10] sm:$0xff]  ;;  %v31_v12 = vld [vmem:[%s1092_s1 + $0x48] sm:$0xff]  ;;  %v33_v15 = vld [vmem:[%s1092_s1 + $0x58] sm:$0xff] }
   0x4   :  { %v28_v11 = vld [vmem:[%s1092_s1 + $0x30] sm:$0xff]  ;;  %v35_v14 = vld [vmem:[%s1092_s1 + $0x68] sm:$0xff]  ;;  %v37_v16 = vld [vmem:[%s1092_s1 + $0x78] sm:$0xff] }
   0x5   :  { %537 = vmatprep.subr.bf16.mxu0 %v536_v4  ;;  %v570_v13 = vpack.c.bf16 %v28_v11, %v24_v10  ;;  %569 = vmatprep.subr.bf16.mxu1 %v568_v8  ;;  %v540_v17 = vpack.c.bf16 %v35_v14, %v31_v12  ;;  %v572_v18 = vpack.c.bf16 %v37_v16, %v33_v15  ;;  %v30_v19 = vld [vmem:[%s1092_s1 + $0x40] sm:$0xff]  ;;  %v32_v21 = vld [vmem:[%s1092_s1 + $0x50] sm:$0xff]  ;;  %v39_v24 = vld [vmem:[%s1092_s1 + $0x88] sm:$0xff] }
   0x6   :  { %539 = vmatpush1.bf16.msra.mxu0 %v538_v9  ;;  %v34_v20 = vld [vmem:[%s1092_s1 + $0x60] sm:$0xff]  ;;  %v36_v23 = vld [vmem:[%s1092_s1 + $0x70] sm:$0xff]  ;;  %v43_v25 = vld [vmem:[%s1092_s1 + $0xa8] sm:$0xff] }
   0x7   :  { %571 = vmatpush1.bf16.msra.mxu1 %v570_v13  ;;  %v542_v22 = vpack.c.bf16 %v34_v20, %v30_v19  ;;  %541 = vmatprep.subr.bf16.mxu0 %v540_v17  ;;  %v574_v26 = vpack.c.bf16 %v36_v23, %v32_v21  ;;  %v544_v27 = vpack.c.bf16 %v43_v25, %v39_v24  ;;  %v41_v28 = vld [vmem:[%s1092_s1 + $0x98] sm:$0xff]  ;;  %v38_v30 = vld [vmem:[%s1092_s1 + $0x80] sm:$0xff]  ;;  %v40_v33 = vld [vmem:[%s1092_s1 + $0x90] sm:$0xff] }
   0x8   :  { %573 = vmatprep.subr.bf16.mxu1 %v572_v18  ;;  %v45_v29 = vld [vmem:[%s1092_s1 + $0xb8] sm:$0xff]  ;;  %v42_v32 = vld [vmem:[%s1092_s1 + $0xa0] sm:$0xff]  ;;  %v44_v34 = vld [vmem:[%s1092_s1 + $0xb0] sm:$0xff] }
   0x9   :  { %v576_v31 = vpack.c.bf16 %v45_v29, %v41_v28  ;;  %v546_v35 = vpack.c.bf16 %v42_v32, %v38_v30  ;;  %v47_v36 = vld [vmem:[%s1092_s1 + $0xc8] sm:$0xff]  ;;  %v49_v38 = vld [vmem:[%s1092_s1 + $0xd8] sm:$0xff]  ;;  %v578_v39 = vpack.c.bf16 %v44_v34, %v40_v33  ;;  %v46_v42 = vld [vmem:[%s1092_s1 + $0xc0] sm:$0xff] }
   0xa   :  { %543 = vmatpush1.bf16.msra.mxu0 %v542_v22  ;;  %v51_v37 = vld [vmem:[%s1092_s1 + $0xe8] sm:$0xff]  ;;  %v53_v41 = vld [vmem:[%s1092_s1 + $0xf8] sm:$0xff]  ;;  %v50_v43 = vld [vmem:[%s1092_s1 + $0xe0] sm:$0xff] }
   0xb   :  { %575 = vmatpush1.bf16.msra.mxu1 %v574_v26  ;;  %545 = vmatprep.subr.bf16.mxu0 %v544_v27  ;;  %v548_v40 = vpack.c.bf16 %v51_v37, %v47_v36  ;;  %v580_v44 = vpack.c.bf16 %v53_v41, %v49_v38  ;;  %v48_v45 = vld [vmem:[%s1092_s1 + $0xd0] sm:$0xff]  ;;  %v55_v47 = vld [vmem:[%s1092_s1 + $0x108] sm:$0xff]  ;;  %v57_v49 = vld [vmem:[%s1092_s1 + $0x118] sm:$0xff]  ;;  %v550_v51 = vpack.c.bf16 %v50_v43, %v46_v42 }
   0xc   :  { %577 = vmatprep.subr.bf16.mxu1 %v576_v31  ;;  %v52_v46 = vld [vmem:[%s1092_s1 + $0xf0] sm:$0xff]  ;;  %v59_v48 = vld [vmem:[%s1092_s1 + $0x128] sm:$0xff]  ;;  %v61_v50 = vld [vmem:[%s1092_s1 + $0x138] sm:$0xff] }
   0xd   :  { %v582_v52 = vpack.c.bf16 %v52_v46, %v48_v45  ;;  %v552_v53 = vpack.c.bf16 %v59_v48, %v55_v47  ;;  %v54_v54 = vld [vmem:[%s1092_s1 + $0x100] sm:$0xff]  ;;  %v56_v56 = vld [vmem:[%s1092_s1 + $0x110] sm:$0xff]  ;;  %v584_v57 = vpack.c.bf16 %v61_v50, %v57_v49  ;;  %v63_v59 = vld [vmem:[%s1092_s1 + $0x148] sm:$0xff] }
   0xe   :  { %547 = vmatpush1.bf16.msra.mxu0 %v546_v35  ;;  %v58_v55 = vld [vmem:[%s1092_s1 + $0x120] sm:$0xff]  ;;  %v60_v58 = vld [vmem:[%s1092_s1 + $0x130] sm:$0xff]  ;;  %v67_v60 = vld [vmem:[%s1092_s1 + $0x168] sm:$0xff] }
   0xf   :  { %579 = vmatpush1.bf16.msra.mxu1 %v578_v39  ;;  %549 = vmatprep.subr.bf16.mxu0 %v548_v40  ;;  %v65_v61 = vld [vmem:[%s1092_s1 + $0x158] sm:$0xff]  ;;  %v554_v63 = vpack.c.bf16 %v58_v55, %v54_v54  ;;  %v586_v0 = vpack.c.bf16 %v60_v58, %v56_v56  ;;  %v556_v1 = vpack.c.bf16 %v67_v60, %v63_v59  ;;  %v62_v2 = vld [vmem:[%s1092_s1 + $0x140] sm:$0xff]  ;;  %v64_v4 = vld [vmem:[%s1092_s1 + $0x150] sm:$0xff] }
  0x10   :  { %581 = vmatprep.subr.bf16.mxu1 %v580_v44  ;;  %v69_v62 = vld [vmem:[%s1092_s1 + $0x178] sm:$0xff]  ;;  %v66_v3 = vld [vmem:[%s1092_s1 + $0x160] sm:$0xff]  ;;  %v68_v6 = vld [vmem:[%s1092_s1 + $0x170] sm:$0xff] }
  0x11   :  { %v588_v5 = vpack.c.bf16 %v69_v62, %v65_v61  ;;  %v71_v7 = vld [vmem:[%s1092_s1 + $0x188] sm:$0xff]  ;;  %v73_v9 = vld [vmem:[%s1092_s1 + $0x198] sm:$0xff]  ;;  %v558_v11 = vpack.c.bf16 %v66_v3, %v62_v2  ;;  %v590_v12 = vpack.c.bf16 %v68_v6, %v64_v4  ;;  %v70_v14 = vld [vmem:[%s1092_s1 + $0x180] sm:$0xff] }
  0x12   :  { %551 = vmatpush1.bf16.msra.mxu0 %v550_v51  ;;  %v75_v8 = vld [vmem:[%s1092_s1 + $0x1a8] sm:$0xff]  ;;  %v77_v10 = vld [vmem:[%s1092_s1 + $0x1b8] sm:$0xff]  ;;  %v74_v15 = vld [vmem:[%s1092_s1 + $0x1a0] sm:$0xff] }
  0x13   :  { %583 = vmatpush1.bf16.msra.mxu1 %v582_v52  ;;  %553 = vmatprep.subr.bf16.mxu0 %v552_v53  ;;  %v560_v13 = vpack.c.bf16 %v75_v8, %v71_v7  ;;  %v72_v16 = vld [vmem:[%s1092_s1 + $0x190] sm:$0xff]  ;;  %v592_v17 = vpack.c.bf16 %v77_v10, %v73_v9  ;;  %v79_v19 = vld [vmem:[%s1092_s1 + $0x1c8] sm:$0xff]  ;;  %v81_v21 = vld [vmem:[%s1092_s1 + $0x1d8] sm:$0xff]  ;;  %v562_v23 = vpack.c.bf16 %v74_v15, %v70_v14 }
  0x14   :  { %585 = vmatprep.subr.bf16.mxu1 %v584_v57  ;;  %v76_v18 = vld [vmem:[%s1092_s1 + $0x1b0] sm:$0xff]  ;;  %v83_v20 = vld [vmem:[%s1092_s1 + $0x1e8] sm:$0xff]  ;;  %v85_v22 = vld [vmem:[%s1092_s1 + $0x1f8] sm:$0xff] }
  0x15   :  { %v594_v24 = vpack.c.bf16 %v76_v18, %v72_v16  ;;  %v564_v25 = vpack.c.bf16 %v83_v20, %v79_v19  ;;  %v78_v26 = vld [vmem:[%s1092_s1 + $0x1c0] sm:$0xff]  ;;  %v80_v28 = vld [vmem:[%s1092_s1 + $0x1d0] sm:$0xff]  ;;  %v596_v29 = vpack.c.bf16 %v85_v22, %v81_v21  ;;  %v271_v32 = vld [vmem:[%s1093_s3 + $0x88] sm:$0xff] }
  0x16   :  { %555 = vmatpush1.bf16.msra.mxu0 %v554_v63  ;;  %v82_v27 = vld [vmem:[%s1092_s1 + $0x1e0] sm:$0xff]  ;;  %v84_v30 = vld [vmem:[%s1092_s1 + $0x1f0] sm:$0xff]  ;;  %v303_v34 = vld [vmem:[%s1093_s3 + $0x188] sm:$0xff] }
  0x17   :  { %587 = vmatpush1.bf16.msra.mxu1 %v586_v0  ;;  %557 = vmatprep.subr.bf16.mxu0 %v556_v1  ;;  %v270_v31 = vld [vmem:[%s1093_s3 + $0x80] sm:$0xff]  ;;  %v566_v35 = vpack.c.bf16 %v82_v27, %v78_v26  ;;  %v598_v36 = vpack.c.bf16 %v84_v30, %v80_v28  ;;  %v255_v39 = vld [vmem:[%s1093_s3 + $0x8] sm:$0xff]  ;;  %v272_v43 = vld [vmem:[%s1093_s3 + $0x90] sm:$0xff] }
  0x18   :  { %589 = vmatprep.subr.bf16.mxu1 %v588_v5  ;;  %v302_v33 = vld [vmem:[%s1093_s3 + $0x180] sm:$0xff]  ;;  %v600_v37 = vpack.c.bf16 %v271_v32, %v270_v31  ;;  %v287_v42 = vld [vmem:[%s1093_s3 + $0x108] sm:$0xff]  ;;  %v273_v44 = vld [vmem:[%s1093_s3 + $0x98] sm:$0xff] }
  0x19   :  { %v254_v38 = vld [vmem:[%s1093_s3] sm:$0xff]  ;;  %v632_v41 = vpack.c.bf16 %v303_v34, %v302_v33  ;;  %v304_v45 = vld [vmem:[%s1093_s3 + $0x190] sm:$0xff]  ;;  %v305_v46 = vld [vmem:[%s1093_s3 + $0x198] sm:$0xff]  ;;  %v604_v50 = vpack.c.bf16 %v273_v44, %v272_v43 }
  0x1a   :  { %559 = vmatpush1.bf16.msra.mxu0 %v558_v11  ;;  %v286_v40 = vld [vmem:[%s1093_s3 + $0x100] sm:$0xff]  ;;  %v602_v48 = vpack.c.bf16 %v255_v39, %v254_v38  ;;  %v256_v51 = vld [vmem:[%s1093_s3 + $0x10] sm:$0xff]  ;;  %v257_v52 = vld [vmem:[%s1093_s3 + $0x18] sm:$0xff]  ;;  %v636_v54 = vpack.c.bf16 %v305_v46, %v304_v45 }
  0x1b   :  { %591 = vmatpush1.bf16.msra.mxu1 %v590_v12  ;;  %561 = vmatprep.subr.bf16.mxu0 %v560_v13  ;;  %v21_v47 = vld [vmem:[%s1094_s0] sm:$0x1]  ;;  %v634_v49 = vpack.c.bf16 %v287_v42, %v286_v40  ;;  %v288_v53 = vld [vmem:[%s1093_s3 + $0x110] sm:$0xff]  ;;  %v289_v55 = vld [vmem:[%s1093_s3 + $0x118] sm:$0xff]  ;;  %v606_v60 = vpack.c.bf16 %v257_v52, %v256_v51 }
  0x1c   :  { %593 = vmatprep.subr.bf16.mxu1 %v592_v17  ;;  %v274_v56 = vld [vmem:[%s1093_s3 + $0xa0] sm:$0xff]  ;;  %v275_v57 = vld [vmem:[%s1093_s3 + $0xa8] sm:$0xff]  ;;  %v638_v61 = vpack.c.bf16 %v289_v55, %v288_v53  ;;  %v276_v4 = vld [vmem:[%s1093_s3 + $0xb0] sm:$0xff] }
  0x1d   :  { %v306_v58 = vld [vmem:[%s1093_s3 + $0x1a0] sm:$0xff]  ;;  %v307_v59 = vld [vmem:[%s1093_s3 + $0x1a8] sm:$0xff]  ;;  %v608_v62 = vpack.c.bf16 %v275_v57, %v274_v56  ;;  %v277_v5 = vld [vmem:[%s1093_s3 + $0xb8] sm:$0xff] }
  0x1e   :  { %563 = vmatpush1.bf16.msra.mxu0 %v562_v23  ;;  %v258_v63 = vld [vmem:[%s1093_s3 + $0x20] sm:$0xff]  ;;  %v259_v0 = vld [vmem:[%s1093_s3 + $0x28] sm:$0xff]  ;;  %v640_v2 = vpack.c.bf16 %v307_v59, %v306_v58  ;;  %v308_v6 = vld [vmem:[%s1093_s3 + $0x1b0] sm:$0xff]  ;;  %v612_v10 = vpack.c.bf16 %v277_v5, %v276_v4 }
  0x1f   :  { %595 = vmatpush1.bf16.msra.mxu1 %v594_v24  ;;  %565 = vmatprep.subr.bf16.mxu0 %v564_v25  ;;  %v290_v1 = vld [vmem:[%s1093_s3 + $0x120] sm:$0xff]  ;;  %v291_v3 = vld [vmem:[%s1093_s3 + $0x128] sm:$0xff]  ;;  %v309_v7 = vld [vmem:[%s1093_s3 + $0x1b8] sm:$0xff]  ;;  %v610_v8 = vpack.c.bf16 %v259_v0, %v258_v63 }
  0x20   :  { %597 = vmatprep.subr.bf16.mxu1 %v596_v29  ;;  %v642_v9 = vpack.c.bf16 %v291_v3, %v290_v1  ;;  %v260_v11 = vld [vmem:[%s1093_s3 + $0x30] sm:$0xff]  ;;  %v261_v12 = vld [vmem:[%s1093_s3 + $0x38] sm:$0xff]  ;;  %v644_v14 = vpack.c.bf16 %v309_v7, %v308_v6  ;;  %v278_v16 = vld [vmem:[%s1093_s3 + $0xc0] sm:$0xff] }
  0x21   :  { %v292_v13 = vld [vmem:[%s1093_s3 + $0x130] sm:$0xff]  ;;  %v293_v15 = vld [vmem:[%s1093_s3 + $0x138] sm:$0xff]  ;;  %v279_v17 = vld [vmem:[%s1093_s3 + $0xc8] sm:$0xff]  ;;  %v614_v20 = vpack.c.bf16 %v261_v12, %v260_v11 }
  0x22   :  { %567 = vmatpush1.bf16.msra.mxu0 %v566_v35  ;;  %v310_v18 = vld [vmem:[%s1093_s3 + $0x1c0] sm:$0xff]  ;;  %v311_v19 = vld [vmem:[%s1093_s3 + $0x1c8] sm:$0xff]  ;;  %v646_v21 = vpack.c.bf16 %v293_v15, %v292_v13  ;;  %v616_v22 = vpack.c.bf16 %v279_v17, %v278_v16  ;;  %v280_v28 = vld [vmem:[%s1093_s3 + $0xd0] sm:$0xff] }
  0x23   :  { %599 = vmatpush1.bf16.msra.mxu1 %v598_v36  ;;  %601 = vmatprep.subr.bf16.mxu0 %v600_v37  ;;  %v262_v23 = vld [vmem:[%s1093_s3 + $0x40] sm:$0xff]  ;;  %v263_v24 = vld [vmem:[%s1093_s3 + $0x48] sm:$0xff]  ;;  %v648_v26 = vpack.c.bf16 %v311_v19, %v310_v18  ;;  %v281_v29 = vld [vmem:[%s1093_s3 + $0xd8] sm:$0xff] }
  0x24   :  { %633 = vmatprep.subr.bf16.mxu1 %v632_v41  ;;  %v294_v25 = vld [vmem:[%s1093_s3 + $0x140] sm:$0xff]  ;;  %v295_v27 = vld [vmem:[%s1093_s3 + $0x148] sm:$0xff]  ;;  %v312_v30 = vld [vmem:[%s1093_s3 + $0x1d0] sm:$0xff]  ;;  %v618_v32 = vpack.c.bf16 %v263_v24, %v262_v23  ;;  %v620_v34 = vpack.c.bf16 %v281_v29, %v280_v28 }
  0x25   :  { %173 = vmatmul.mubr.f32.vlgmr.msra.gmra.mrb[0].mxu0 %v21_v47  ;;  %v313_v31 = vld [vmem:[%s1093_s3 + $0x1d8] sm:$0xff]  ;;  %v650_v33 = vpack.c.bf16 %v295_v27, %v294_v25  ;;  %v264_v35 = vld [vmem:[%s1093_s3 + $0x50] sm:$0xff]  ;;  %v282_v40 = vld [vmem:[%s1093_s3 + $0xe0] sm:$0xff]  ;;  %v319_v27 = vstv %s1096_s4 }
  0x26   :  { %244 = vmatmul.mubr.f32.vlgmr.msra.gmra.mrb[0].mxu1 %v21_v47  ;;  %603 = vmatpush3.bf16.msra.mxu0 %v602_v48  ;;  %v265_v36 = vld [vmem:[%s1093_s3 + $0x58] sm:$0xff]  ;;  %v296_v37 = vld [vmem:[%s1093_s3 + $0x150] sm:$0xff]  ;;  %v652_v38 = vpack.c.bf16 %v313_v31, %v312_v30  ;;  %v283_v41 = vld [vmem:[%s1093_s3 + $0xe8] sm:$0xff] }
  0x27   :  { %635 = vmatpush3.bf16.msra.mxu1 %v634_v49  ;;  %605 = vmatprep.subr.bf16.mxu0 %v604_v50  ;;  %v297_v39 = vld [vmem:[%s1093_s3 + $0x158] sm:$0xff]  ;;  %v314_v42 = vld [vmem:[%s1093_s3 + $0x1e0] sm:$0xff]  ;;  %v315_v43 = vld [vmem:[%s1093_s3 + $0x1e8] sm:$0xff]  ;;  %v622_v44 = vpack.c.bf16 %v265_v36, %v264_v35  ;;  %v624_v46 = vpack.c.bf16 %v283_v41, %v282_v40 }
  0x28   :  { %637 = vmatprep.subr.bf16.mxu1 %v636_v54  ;;  %v654_v45 = vpack.c.bf16 %v297_v39, %v296_v37  ;;  %v656_v47 = vpack.c.bf16 %v315_v43, %v314_v42  ;;  %v266_v48 = vld [vmem:[%s1093_s3 + $0x60] sm:$0xff]  ;;  %v267_v49 = vld [vmem:[%s1093_s3 + $0x68] sm:$0xff]  ;;  %v284_v54 = vld [vmem:[%s1093_s3 + $0xf0] sm:$0xff] }
  0x29   :  { %v298_v50 = vld [vmem:[%s1093_s3 + $0x160] sm:$0xff]  ;;  %v626_v51 = vpack.c.bf16 %v267_v49, %v266_v48  ;;  %v299_v52 = vld [vmem:[%s1093_s3 + $0x168] sm:$0xff]  ;;  %v285_v55 = vld [vmem:[%s1093_s3 + $0xf8] sm:$0xff] }
  0x2a   :  { %607 = vmatpush3.bf16.msra.mxu0 %v606_v60  ;;  %v658_v53 = vpack.c.bf16 %v299_v52, %v298_v50  ;;  %v316_v56 = vld [vmem:[%s1093_s3 + $0x1f0] sm:$0xff]  ;;  %v628_v57 = vpack.c.bf16 %v285_v55, %v284_v54  ;;  %v317_v58 = vld [vmem:[%s1093_s3 + $0x1f8] sm:$0xff]  ;;  %v86_v5 = vld [vmem:[%s1095_s2] sm:$0xf] }
  0x2b   :  { %639 = vmatpush3.bf16.msra.mxu1 %v638_v61  ;;  %609 = vmatprep.subr.bf16.mxu0 %v608_v62  ;;  %v268_v59 = vld [vmem:[%s1093_s3 + $0x70] sm:$0xff]  ;;  %v269_v60 = vld [vmem:[%s1093_s3 + $0x78] sm:$0xff]  ;;  %v660_v61 = vpack.c.bf16 %v317_v58, %v316_v56 }
  0x2c   :  { %641 = vmatprep.subr.bf16.mxu1 %v640_v2  ;;  %v630_v62 = vpack.c.bf16 %v269_v60, %v268_v59  ;;  %v300_v63 = vld [vmem:[%s1093_s3 + $0x170] sm:$0xff]  ;;  %v301_v0 = vld [vmem:[%s1093_s3 + $0x178] sm:$0xff]  ;;  %v88_v2 = vlaneseq }
  0x2d   :  { %v662_v1 = vpack.c.bf16 %v301_v0, %v300_v63 }
  0x2e   :  { %611 = vmatpush3.bf16.msra.mxu0 %v610_v8  ;;  %v89_v3 = vshrl.u32 %v88_v2, 7 }
  0x2f   :  { %643 = vmatpush3.bf16.msra.mxu1 %v642_v9  ;;  %613 = vmatprep.subr.bf16.mxu0 %v612_v10 }
  0x30   :  { %645 = vmatprep.subr.bf16.mxu1 %v644_v14  ;;  %v90_v4 = vsub.s32 0, %v89_v3  ;;  %v98_v6 = vsub.s32 2, %v89_v3  ;;  %v94_v7 = vsub.s32 1, %v89_v3  ;;  %v102_v8 = vsub.s32 3, %v89_v3 }
  0x32   :  { %615 = vmatpush3.bf16.msra.mxu0 %v614_v20  ;;  %v91_v9 = vrot.slane %v86_v5, %v90_v4  ;;  %v99_v10 = vrot.slane %v86_v5, %v98_v6  ;;  %v95_v11 = vrot.slane %v86_v5, %v94_v7  ;;  %v103_v12 = vrot.slane %v86_v5, %v102_v8 }
  0x33   :  { %647 = vmatpush3.bf16.msra.mxu1 %v646_v21  ;;  %617 = vmatprep.subr.bf16.mxu0 %v616_v22 }
  0x34   :  { %649 = vmatprep.subr.bf16.mxu1 %v648_v26 }
  0x36   :  { %619 = vmatpush3.bf16.msra.mxu0 %v618_v32 }
  0x37   :  { %651 = vmatpush3.bf16.msra.mxu1 %v650_v33  ;;  %621 = vmatprep.subr.bf16.mxu0 %v620_v34 }
  0x38   :  { %653 = vmatprep.subr.bf16.mxu1 %v652_v38 }
  0x3a   :  { %623 = vmatpush3.bf16.msra.mxu0 %v622_v44 }
  0x3b   :  { %655 = vmatpush3.bf16.msra.mxu1 %v654_v45  ;;  %625 = vmatprep.subr.bf16.mxu0 %v624_v46 }
  0x3c   :  { %657 = vmatprep.subr.bf16.mxu1 %v656_v47 }
  0x3e   :  { %627 = vmatpush3.bf16.msra.mxu0 %v626_v51 }
  0x3f   :  { %659 = vmatpush3.bf16.msra.mxu1 %v658_v53  ;;  %629 = vmatprep.subr.bf16.mxu0 %v628_v57 }
  0x40   :  { %661 = vmatprep.subr.bf16.mxu1 %v660_v61 }
  0x42   :  { %631 = vmatpush3.bf16.msra.mxu0 %v630_v62 }
  0x43   :  { %663 = vmatpush3.bf16.msra.mxu1 %v662_v1 }
  0xf8   :  { %v174_v13 = vpop.f32.mrb[0].mxu0 }
  0xf9   :  { %v175_v14 = vadd.f32 %v174_v13, %v91_v9  ;;  %v245_v15 = vpop.f32.mrb[0].mxu1  ;;  %v176_v16 = vpop.f32.mrb[1].mxu0 }
  0xfa   :  { %v246_v17 = vadd.f32 %v245_v15, %v99_v10  ;;  %v177_v18 = vadd.f32 %v176_v16, %v95_v11  ;;  %v247_v19 = vpop.f32.mrb[1].mxu1 }
  0xfb   :  { %v248_v20 = vadd.f32 %v247_v19, %v103_v12  ;;  %v250_v23 = vmax.f32 %v175_v14, 0.0 }
  0xfc   :  { %v252_v21 = vmax.f32 %v246_v17, 0.0  ;;  %v251_v22 = vmax.f32 %v177_v18, 0.0 }
  0xfd   :  { %v253_v24 = vmax.f32 %v248_v20, 0.0 }
  0xfe   :  { %384 = vmatprep.mubr.f32.mxu0 %v251_v22 }
  0xff   :  { %454 = vmatprep.mubr.f32.mxu1 %v253_v24  ;;  %385 = vmatmul.mubr.f32.vlgmr.msra.gmra.mrb[2].mxu0 %v250_v23 }
 0x100   :  { %455 = vmatmul.mubr.f32.vlgmr.msra.gmra.mrb[2].mxu1 %v252_v21 }
 0x1d2   :  { %v498_v25 = vpop.f32.mrb[2].mxu0 }
 0x1d3   :  { %v533_v26 = vpop.f32.mrb[2].mxu1  ;;  %v499_v28 = vpop.f32.mrb[3].mxu0 }
 0x1d4   :  { %v500_v29 = vadd.f32 %v499_v28, %v498_v25  ;;  %v534_v30 = vpop.f32.mrb[3].mxu1 }
 0x1d5   :  { %v535_v31 = vadd.f32 %v534_v30, %v533_v26 }
 0x1d6   :  { %v387_v32 = vadd.f32 %v500_v29, %v319_v27 }
 0x1d8   :  { %v457_v33 = vadd.f32 %v535_v31, %v387_v32 }
 0x1da   :  { %461 = vst.msk [vmem:[%s1097_s5] sm:$0x1] %vm460_vm0, %v457_v33 }

</bundles_post_ra>
